<compile_context>
chip_gen: v7x
topology: tpu7x:2x2x1
jax: 0.10.0
libtpu: 0.0.40
codegen_flags: <defaults>
</compile_context>

<pallas_src>
import functools

import jax
import jax.numpy as jnp
from jax import lax
from jax.experimental import pallas as pl
from jax.experimental.pallas import tpu as pltpu

_LANE = 128


def _round8(n):
    return -(-n // 8) * 8


# ----------------------------- kernel ---------------------------------------

def _kegatv2_kernel(x_ref, adj_ref, pack_ref, out_ref, *,
                    in_dim, hid, out_dim, r_w1, r_w2, r_vec):
    x = x_ref[...]                       # (N, in_dim)
    adj = adj_ref[...]                   # (N, N) 0/1 mask (self-loops included)
    neg = (adj - 1.0) * 1e30             # 0 on edges, -1e30 on non-edges (for masked max)

    wp = pack_ref[...]                   # (r_vec + 8, 128) packed parameters, one DMA
    w_vo = wp[0:out_dim, :]              # (out, 128)  fused wv@wo, zero-padded lanes
    w1 = wp[r_w1:r_w1 + in_dim, 0:hid]   # (in, hid)
    w2 = wp[r_w2:r_w2 + hid, 0:out_dim]  # (hid, out)
    vec = wp[r_vec:r_vec + 8, :]         # (8, 128)  small (1, D) vectors in one tile

    def gat(h, w, a_src, a_dst, bias):
        """Dense-masked GATConv (heads=1, concat=True, negative_slope=0.2)."""
        hp = jnp.dot(h, w, preferred_element_type=jnp.float32)              # (N, D) MXU
        # attention logits on the MXU: no broadcast-mul, no XLU reduce, no transpose
        s_dst = lax.dot_general(hp, a_dst, (((1,), (1,)), ((), ())),
                                preferred_element_type=jnp.float32)         # (N, 1)
        s_src = lax.dot_general(a_src, hp, (((1,), (1,)), ((), ())),
                                preferred_element_type=jnp.float32)         # (1, N)
        e = s_dst + s_src                                                   # e[i,j]
        e = jnp.maximum(e, 0.2 * e) + neg                                   # LeakyReLU(0.2) + mask
        e_max = jnp.max(e, axis=-1, keepdims=True)
        p = jnp.exp(e - e_max) * adj                                        # masked numerator
        inv = pl.reciprocal(jnp.sum(p, axis=-1, keepdims=True), approx=True)  # EUP
        alpha = p * inv                                                     # softmax over sources
        return jnp.dot(alpha, hp, preferred_element_type=jnp.float32) + bias

    # GATConv1 + ReLU
    h1 = gat(x, w1, vec[0:1, 0:hid], vec[1:2, 0:hid], vec[2:3, 0:hid])
    h1 = jnp.maximum(h1, 0.0)

    # GATConv2 + log_softmax over features (dim=1)
    h2 = gat(h1, w2, vec[3:4, 0:out_dim], vec[4:5, 0:out_dim], vec[5:6, 0:out_dim])
    z = h2 - jnp.max(h2, axis=-1, keepdims=True)
    ls = z - jnp.log(jnp.sum(jnp.exp(z), axis=-1, keepdims=True))

    # nn.MultiheadAttention(out_dim, num_heads=1) on a length-1 sequence: softmax over the
    # single key == 1, so attn_out == (x @ wv + bv) @ wo + bo.  wv/wo and bv/bo are fused
    # in the wrapper; the result is written lane-dense (128 cols) for unmasked stores.
    out_ref[...] = jnp.dot(ls, w_vo, preferred_element_type=jnp.float32) + vec[6:7, :]


# ----------------------------- wrapper ---------------------------------------

def _pack_params(p):
    """Fuse the MHA V/O projections and pack every parameter into one lane-dense
    (R, 128) f32 array so the kernel needs a single parameter DMA."""
    in_dim, hid = p["w1"].shape
    out_dim = p["w2"].shape[1]
    w_vo = p["wv"] @ p["wo"]                    # (out, out)
    b_vo = p["bv"] @ p["wo"] + p["bo"]          # (1, out)

    def pad_lanes(a):
        a = a.astype(jnp.float32)
        return jnp.pad(a, ((0, 0), (0, _LANE - a.shape[1])))

    def pad_rows(a, rows):
        return jnp.pad(a, ((0, rows - a.shape[0]), (0, 0)))

    blk_wvo = pad_rows(pad_lanes(w_vo), _round8(out_dim))
    blk_w1 = pad_rows(pad_lanes(p["w1"]), _round8(in_dim))
    blk_w2 = pad_rows(pad_lanes(p["w2"]), _round8(hid))
    vec = jnp.concatenate(
        [pad_lanes(p["asrc1"]), pad_lanes(p["adst1"]), pad_lanes(p["b1"]),
         pad_lanes(p["asrc2"]), pad_lanes(p["adst2"]), pad_lanes(p["b2"]),
         pad_lanes(b_vo), jnp.zeros((1, _LANE), jnp.float32)], axis=0)   # (8, 128)
    pack = jnp.concatenate([blk_wvo, blk_w1, blk_w2, vec], axis=0)

    r_w1 = _round8(out_dim)
    r_w2 = r_w1 + _round8(in_dim)
    r_vec = r_w2 + _round8(hid)
    return pack, dict(w1=r_w1, w2=r_w2, vec=r_vec), (in_dim, hid, out_dim)


def kegatv2_forward(x, adj, params):
    """Whole-graph single-block kernel (small N: everything fits in VMEM)."""
    n = x.shape[0]
    pack, offs, (in_dim, hid, out_dim) = _pack_params(params)
    kernel = functools.partial(
        _kegatv2_kernel, in_dim=in_dim, hid=hid, out_dim=out_dim,
        r_w1=offs["w1"], r_w2=offs["w2"], r_vec=offs["vec"])
    vmem = pl.BlockSpec(memory_space=pltpu.MemorySpace.VMEM)
    out_pad = pl.pallas_call(
        kernel,
        out_shape=jax.ShapeDtypeStruct((n, _LANE), jnp.float32),   # lane-dense output
        in_specs=[vmem, vmem, vmem],
        out_specs=vmem,
    )(x.astype(jnp.float32), adj.astype(jnp.float32), pack)
    return out_pad[:, :out_dim]


# --------------------------- reference (pure JAX) ----------------------------

def kegatv2_reference(x, adj, p):
    def gat(h, w, a_src, a_dst, bias):
        hp = h @ w
        s_src = jnp.sum(hp * a_src, axis=-1, keepdims=True)
        s_dst = jnp.sum(hp * a_dst, axis=-1, keepdims=True)
        e = s_dst + s_src.T
        e = jnp.where(e > 0, e, 0.2 * e)
        mask = adj > 0
        e = jnp.where(mask, e, -1e30)
        num = jnp.where(mask, jnp.exp(e - jnp.max(e, axis=-1, keepdims=True)), 0.0)
        alpha = num / jnp.sum(num, axis=-1, keepdims=True)
        return alpha @ hp + bias

    h1 = jnp.maximum(gat(x, p["w1"], p["asrc1"], p["adst1"], p["b1"]), 0.0)
    h2 = gat(h1, p["w2"], p["asrc2"], p["adst2"], p["b2"])
    ls = jax.nn.log_softmax(h2, axis=1)
    v = ls @ p["wv"] + p["bv"]
    return v @ p["wo"] + p["bo"]    # length-1 sequence -> attention weight == 1


# ------------------------------- setup ---------------------------------------

def init_params(key, in_dim, hidden_dim, out_dim):
    ks = jax.random.split(key, 16)

    def g(k, shape, scale=0.2):
        return scale * jax.random.normal(k, shape, dtype=jnp.float32)

    return dict(
        # GATConv1: lin weight (pre-transposed), att_src/att_dst, bias
        w1=g(ks[0], (in_dim, hidden_dim)),
        asrc1=g(ks[1], (1, hidden_dim)),
        adst1=g(ks[2], (1, hidden_dim)),
        b1=g(ks[3], (1, hidden_dim)),
        # GATConv2
        w2=g(ks[4], (hidden_dim, out_dim)),
        asrc2=g(ks[5], (1, out_dim)),
        adst2=g(ks[6], (1, out_dim)),
        b2=g(ks[7], (1, out_dim)),
        # MultiheadAttention(out_dim, num_heads=1), in_proj split into q/k/v (pre-transposed).
        # q/k (and their biases) exist in the torch module but are mathematically dead for a
        # length-1 sequence (softmax over one key == 1), so the kernel never reads them.
        wq=g(ks[8], (out_dim, out_dim)),
        wk=g(ks[9], (out_dim, out_dim)),
        wv=g(ks[10], (out_dim, out_dim)),
        bq=g(ks[11], (1, out_dim)),
        bk=g(ks[12], (1, out_dim)),
        bv=g(ks[13], (1, out_dim)),
        wo=g(ks[14], (out_dim, out_dim)),
        bo=g(ks[15], (1, out_dim)),
    )


def build_adjacency(edge_index, num_nodes):
    # adj[i, j] = 1 iff edge j -> i (source=edge_index[0], target=edge_index[1]),
    # plus self-loops (GATConv add_self_loops=True).
    src, dst = edge_index
    adj = jnp.zeros((num_nodes, num_nodes), jnp.float32).at[dst, src].set(1.0)
    return jnp.maximum(adj, jnp.eye(num_nodes, dtype=jnp.float32))


if __name__ == "__main__":
    N, IN_DIM, HIDDEN_DIM, OUT_DIM = 16, 8, 32, 8

    key = jax.random.PRNGKey(0)
    k_x, k_p = jax.random.split(key)
    x = jax.random.normal(k_x, (N, IN_DIM), dtype=jnp.float32)
    params = init_params(k_p, IN_DIM, HIDDEN_DIM, OUT_DIM)

    # Deterministic small graph: bidirectional ring + a few chords.
    src, dst = [], []
    for i in range(N):
        src += [i, (i + 1) % N]
        dst += [(i + 1) % N, i]
    for i in range(0, N, 2):
        src.append(i)
        dst.append((i + 4) % N)
    edge_index = jnp.array([src, dst], dtype=jnp.int32)   # (2, E)
    adj = build_adjacency(edge_index, N)

    out = jax.block_until_ready(kegatv2_forward(x, adj, params))
    ref = kegatv2_reference(x, adj, params)
    assert out.shape == (N, OUT_DIM)
    # slightly looser tolerance: the kernel uses the EUP approximate reciprocal for the
    # two attention-softmax normalizations.
    assert jnp.allclose(out, ref, rtol=5e-3, atol=5e-3), "mismatch vs JAX reference"

    print("KERNEL_OK")
</pallas_src>

<mosaic_0001>
module attributes {stable_mosaic.version = 11 : i64} {
  func.func @_kegatv2_kernel(%arg0: memref<16x8xf32, #tpu.memory_space<vmem>>, %arg1: memref<16x16xf32, #tpu.memory_space<vmem>>, %arg2: memref<56x128xf32, #tpu.memory_space<vmem>>, %arg3: memref<16x128xf32, #tpu.memory_space<vmem>>) attributes {dimension_semantics = [], scalar_prefetch = 0 : i64, scratch_operands = 0 : i64, tpu.core_type = #tpu.core_type<tc>} {
    %c0 = arith.constant 0 : index
    %c0_0 = arith.constant 0 : index
    %0 = vector.load %arg0[%c0, %c0_0] : memref<16x8xf32, #tpu.memory_space<vmem>>, vector<16x8xf32>
    %c0_1 = arith.constant 0 : index
    %c0_2 = arith.constant 0 : index
    %1 = vector.load %arg1[%c0_1, %c0_2] : memref<16x16xf32, #tpu.memory_space<vmem>>, vector<16x16xf32>
    %cst = arith.constant 1.000000e+00 : f32
    %2 = vector.broadcast %cst : f32 to vector<16x16xf32>
    %3 = arith.subf %1, %2 : vector<16x16xf32>
    %cst_3 = arith.constant 1.000000e+30 : f32
    %4 = vector.broadcast %cst_3 : f32 to vector<16x16xf32>
    %5 = arith.mulf %3, %4 : vector<16x16xf32>
    %c0_4 = arith.constant 0 : index
    %c0_5 = arith.constant 0 : index
    %6 = vector.load %arg2[%c0_4, %c0_5] : memref<56x128xf32, #tpu.memory_space<vmem>>, vector<56x128xf32>
    %7 = vector.extract_strided_slice %6 {offsets = [0, 0], sizes = [8, 128], strides = [1, 1]} : vector<56x128xf32> to vector<8x128xf32>
    %8 = vector.extract_strided_slice %6 {offsets = [8, 0], sizes = [8, 32], strides = [1, 1]} : vector<56x128xf32> to vector<8x32xf32>
    %9 = vector.extract_strided_slice %6 {offsets = [16, 0], sizes = [32, 8], strides = [1, 1]} : vector<56x128xf32> to vector<32x8xf32>
    %10 = vector.extract_strided_slice %6 {offsets = [48, 0], sizes = [8, 128], strides = [1, 1]} : vector<56x128xf32> to vector<8x128xf32>
    %11 = vector.extract_strided_slice %10 {offsets = [0, 0], sizes = [1, 32], strides = [1, 1]} : vector<8x128xf32> to vector<1x32xf32>
    %12 = vector.extract_strided_slice %10 {offsets = [1, 0], sizes = [1, 32], strides = [1, 1]} : vector<8x128xf32> to vector<1x32xf32>
    %13 = vector.extract_strided_slice %10 {offsets = [2, 0], sizes = [1, 32], strides = [1, 1]} : vector<8x128xf32> to vector<1x32xf32>
    %cst_6 = arith.constant dense<0.000000e+00> : vector<16x32xf32>
    %14 = tpu.matmul %0, %8, %cst_6 {dimension_numbers = #tpu.dot_dimension_numbers<[1], [0], [0], [1], [0, 0, 1, 1], [], []>} : vector<16x8xf32>, vector<8x32xf32>, vector<16x32xf32> -> vector<16x32xf32>
    %cst_7 = arith.constant dense<0.000000e+00> : vector<16x1xf32>
    %15 = tpu.matmul %14, %12, %cst_7 {dimension_numbers = #tpu.dot_dimension_numbers<[1], [1], [0], [0], [0, 0, 1, 0], [], []>} : vector<16x32xf32>, vector<1x32xf32>, vector<16x1xf32> -> vector<16x1xf32>
    %cst_8 = arith.constant dense<0.000000e+00> : vector<1x16xf32>
    %16 = tpu.matmul %11, %14, %cst_8 {dimension_numbers = #tpu.dot_dimension_numbers<[1], [1], [0], [0], [0, 0, 1, 0], [], []>} : vector<1x32xf32>, vector<16x32xf32>, vector<1x16xf32> -> vector<1x16xf32>
    %17 = vector.broadcast %15 : vector<16x1xf32> to vector<16x16xf32>
    %18 = vector.broadcast %16 : vector<1x16xf32> to vector<16x16xf32>
    %19 = arith.addf %17, %18 : vector<16x16xf32>
    %cst_9 = arith.constant 2.000000e-01 : f32
    %20 = vector.broadcast %cst_9 : f32 to vector<16x16xf32>
    %21 = arith.mulf %20, %19 : vector<16x16xf32>
    %22 = arith.maximumf %19, %21 : vector<16x16xf32>
    %23 = arith.addf %22, %5 : vector<16x16xf32>
    %cst_10 = arith.constant dense<0xFF800000> : vector<16xf32>
    %24 = vector.multi_reduction <maximumf>, %23, %cst_10 [1] : vector<16x16xf32> to vector<16xf32>
    %25 = vector.shape_cast %24 : vector<16xf32> to vector<16x1xf32>
    %26 = vector.broadcast %25 : vector<16x1xf32> to vector<16x16xf32>
    %27 = arith.subf %23, %26 : vector<16x16xf32>
    %28 = math.exp %27 : vector<16x16xf32>
    %29 = arith.mulf %28, %1 : vector<16x16xf32>
    %cst_11 = arith.constant dense<0.000000e+00> : vector<16xf32>
    %30 = vector.multi_reduction <add>, %29, %cst_11 [1] : vector<16x16xf32> to vector<16xf32>
    %31 = vector.shape_cast %30 : vector<16xf32> to vector<16x1xf32>
    %32 = tpu.reciprocal %31 {approx = true} : vector<16x1xf32> -> vector<16x1xf32>
    %33 = vector.broadcast %32 : vector<16x1xf32> to vector<16x16xf32>
    %34 = arith.mulf %29, %33 : vector<16x16xf32>
    %cst_12 = arith.constant dense<0.000000e+00> : vector<16x32xf32>
    %35 = tpu.matmul %34, %14, %cst_12 {dimension_numbers = #tpu.dot_dimension_numbers<[1], [0], [0], [1], [0, 0, 1, 1], [], []>} : vector<16x16xf32>, vector<16x32xf32>, vector<16x32xf32> -> vector<16x32xf32>
    %36 = vector.broadcast %13 : vector<1x32xf32> to vector<16x32xf32>
    %37 = arith.addf %35, %36 : vector<16x32xf32>
    %cst_13 = arith.constant 0.000000e+00 : f32
    %38 = vector.broadcast %cst_13 : f32 to vector<16x32xf32>
    %39 = arith.maximumf %37, %38 : vector<16x32xf32>
    %40 = vector.extract_strided_slice %10 {offsets = [3, 0], sizes = [1, 8], strides = [1, 1]} : vector<8x128xf32> to vector<1x8xf32>
    %41 = vector.extract_strided_slice %10 {offsets = [4, 0], sizes = [1, 8], strides = [1, 1]} : vector<8x128xf32> to vector<1x8xf32>
    %42 = vector.extract_strided_slice %10 {offsets = [5, 0], sizes = [1, 8], strides = [1, 1]} : vector<8x128xf32> to vector<1x8xf32>
    %cst_14 = arith.constant dense<0.000000e+00> : vector<16x8xf32>
    %43 = tpu.matmul %39, %9, %cst_14 {dimension_numbers = #tpu.dot_dimension_numbers<[1], [0], [0], [1], [0, 0, 1, 1], [], []>} : vector<16x32xf32>, vector<32x8xf32>, vector<16x8xf32> -> vector<16x8xf32>
    %cst_15 = arith.constant dense<0.000000e+00> : vector<16x1xf32>
    %44 = tpu.matmul %43, %41, %cst_15 {dimension_numbers = #tpu.dot_dimension_numbers<[1], [1], [0], [0], [0, 0, 1, 0], [], []>} : vector<16x8xf32>, vector<1x8xf32>, vector<16x1xf32> -> vector<16x1xf32>
    %cst_16 = arith.constant dense<0.000000e+00> : vector<1x16xf32>
    %45 = tpu.matmul %40, %43, %cst_16 {dimension_numbers = #tpu.dot_dimension_numbers<[1], [1], [0], [0], [0, 0, 1, 0], [], []>} : vector<1x8xf32>, vector<16x8xf32>, vector<1x16xf32> -> vector<1x16xf32>
    %46 = vector.broadcast %44 : vector<16x1xf32> to vector<16x16xf32>
    %47 = vector.broadcast %45 : vector<1x16xf32> to vector<16x16xf32>
    %48 = arith.addf %46, %47 : vector<16x16xf32>
    %cst_17 = arith.constant 2.000000e-01 : f32
    %49 = vector.broadcast %cst_17 : f32 to vector<16x16xf32>
    %50 = arith.mulf %49, %48 : vector<16x16xf32>
    %51 = arith.maximumf %48, %50 : vector<16x16xf32>
    %52 = arith.addf %51, %5 : vector<16x16xf32>
    %cst_18 = arith.constant dense<0xFF800000> : vector<16xf32>
    %53 = vector.multi_reduction <maximumf>, %52, %cst_18 [1] : vector<16x16xf32> to vector<16xf32>
    %54 = vector.shape_cast %53 : vector<16xf32> to vector<16x1xf32>
    %55 = vector.broadcast %54 : vector<16x1xf32> to vector<16x16xf32>
    %56 = arith.subf %52, %55 : vector<16x16xf32>
    %57 = math.exp %56 : vector<16x16xf32>
    %58 = arith.mulf %57, %1 : vector<16x16xf32>
    %cst_19 = arith.constant dense<0.000000e+00> : vector<16xf32>
    %59 = vector.multi_reduction <add>, %58, %cst_19 [1] : vector<16x16xf32> to vector<16xf32>
    %60 = vector.shape_cast %59 : vector<16xf32> to vector<16x1xf32>
    %61 = tpu.reciprocal %60 {approx = true} : vector<16x1xf32> -> vector<16x1xf32>
    %62 = vector.broadcast %61 : vector<16x1xf32> to vector<16x16xf32>
    %63 = arith.mulf %58, %62 : vector<16x16xf32>
    %cst_20 = arith.constant dense<0.000000e+00> : vector<16x8xf32>
    %64 = tpu.matmul %63, %43, %cst_20 {dimension_numbers = #tpu.dot_dimension_numbers<[1], [0], [0], [1], [0, 0, 1, 1], [], []>} : vector<16x16xf32>, vector<16x8xf32>, vector<16x8xf32> -> vector<16x8xf32>
    %65 = vector.broadcast %42 : vector<1x8xf32> to vector<16x8xf32>
    %66 = arith.addf %64, %65 : vector<16x8xf32>
    %cst_21 = arith.constant dense<0xFF800000> : vector<16xf32>
    %67 = vector.multi_reduction <maximumf>, %66, %cst_21 [1] : vector<16x8xf32> to vector<16xf32>
    %68 = vector.shape_cast %67 : vector<16xf32> to vector<16x1xf32>
    %69 = vector.broadcast %68 : vector<16x1xf32> to vector<16x8xf32>
    %70 = arith.subf %66, %69 : vector<16x8xf32>
    %71 = math.exp %70 : vector<16x8xf32>
    %cst_22 = arith.constant dense<0.000000e+00> : vector<16xf32>
    %72 = vector.multi_reduction <add>, %71, %cst_22 [1] : vector<16x8xf32> to vector<16xf32>
    %73 = vector.shape_cast %72 : vector<16xf32> to vector<16x1xf32>
    %74 = math.log %73 : vector<16x1xf32>
    %75 = vector.broadcast %74 : vector<16x1xf32> to vector<16x8xf32>
    %76 = arith.subf %70, %75 : vector<16x8xf32>
    %cst_23 = arith.constant dense<0.000000e+00> : vector<16x128xf32>
    %77 = tpu.matmul %76, %7, %cst_23 {dimension_numbers = #tpu.dot_dimension_numbers<[1], [0], [0], [1], [0, 0, 1, 1], [], []>} : vector<16x8xf32>, vector<8x128xf32>, vector<16x128xf32> -> vector<16x128xf32>
    %78 = vector.extract_strided_slice %10 {offsets = [6, 0], sizes = [1, 128], strides = [1, 1]} : vector<8x128xf32> to vector<1x128xf32>
    %79 = vector.broadcast %78 : vector<1x128xf32> to vector<16x128xf32>
    %80 = arith.addf %77, %79 : vector<16x128xf32>
    %c0_24 = arith.constant 0 : index
    %c0_25 = arith.constant 0 : index
    %81 = vector.load %arg3[%c0_24, %c0_25] : memref<16x128xf32, #tpu.memory_space<vmem>>, vector<16x128xf32>
    tpu.vector_store %arg3[%c0_24, %c0_25], %80 {strides = array<i32>} : memref<16x128xf32, #tpu.memory_space<vmem>>, vector<16x128xf32>,
    return
  }
}

</mosaic_0001>

<bundles_post_ra>
// kernel: tpu_custom_call.1
= control target key start
LH: loop header
LB: loop body
LE: loop exit
PB: predicated region body
PF: predicated region fallthrough
CT: control target
= control target key end

     0   :  { %8 = vsyncpa [#allocation3], 0  ;;  %s1101_s0 = inlined_call_operand.vmem [shape: f32[16,8], index: 0, kind: input, shape index: {}]   ;;  %s1102_s1 = inlined_call_operand.vmem [shape: f32[16,16], index: 1, kind: input, shape index: {}]   ;;  %s1103_s2 = inlined_call_operand.hbm [shape: f32[56,128], index: 2, kind: input, shape index: {}]   ;;  %s1104_s3 = inlined_call_operand.hbm [shape: f32[16,128], index: 3, kind: output, shape index: {}]  }
   0x1   :  { %9 = vsyncpa [#allocation4], 0  ;;  %s959_s12 = smov [#allocation2]   ;;  %s911_s16 = scalar_lea.hbm %s1103_s2, 896 }
   0x2   :  { %s19_s13 = sshll.u32 %s959_s12, 4  ;;  %p912_p0 = scmp.ne.s32.totalorder %s1103_s2, %s911_s16  ;;  %s20_s13 = int_to_ptr.vmem [resolvable:$true] %s19_s13 }
   0x3   :  { %p915_p1 = scmp.lt.u32.totalorder %s911_s16, %s1103_s2 }
   0x5   :  { %p917_p2 = pnand %p915_p1, %p912_p0 }
   0x7   :  { %920 = shalt.err (!%p917_p2)
}
   0x8   :  { %s921_s21 = scalar_lea.vmem %s20_s13, 896  ;;  %p926_p4 = scmp.lt.s32.totalorder %s20_s13, %s20_s13 }
   0x9   :  { %p922_p3 = scmp.ne.s32.totalorder %s20_s13, %s921_s21  ;;  %p927_p5 = scmp.lt.s32.totalorder %s921_s21, %s921_s21 }
   0xb   :  { %p928_p6 = por %p927_p5, %p926_p4 }
   0xd   :  { %p929_p7 = pnand %p928_p6, %p922_p3 }
   0xf   :  { %932 = shalt.err (!%p929_p7)
}
  0x10   :  { %s960_s22 = smov 128   ;;  %s961_s23 = smov 8  }
  0x11   :  { %25 = dma.hbm_to_vmem [thread:$0]  %s1103_s2, 896, %s20_s13, [#allocation3], %s960_s22, %s960_s22, %s961_s23  }
  0x12   :  { %955 = dma.done.wait [#allocation3], 896  }
  0x13   :  { %956 = vsyncadd [#allocation3], 4294966400  ;;  %vm44_vm0 = vcmask 64512   ;;  %v38_v0 = vld [vmem:[#allocation2 + $0x8] sm:$0xff]  ;;  %v29_v1 = vld [vmem:[%s1101_s0] sm:$0xff]  ;;  %v962_v3 = vmov 0.0|0.0   ;;  %v126_v5 = vlaneseq }
  0x14   :  { %v30_v2 = vld [vmem:[%s1101_s0 + $0x8] sm:$0xff]  ;;  %807 = vmatprep.subr.mxu0 %v38_v0  ;;  %809 = vmatprep.mubr.msk.f32.mxu0 %vm44_vm0, %v29_v1  ;;  %vm963_vm1 = vmmov 0   ;;  %v964_v4 = vmov 0.0   ;;  %v1013_v8 = vld [vmem:[#allocation2 + $0x30] sm:$0xff]  ;;  %vm132_vm2 = vcmask 261120   ;;  %v1027_v19 = vld [vmem:[%s1102_s1] sm:$0xff] }
  0x15   :  { %808 = vmatpush3.msra.mxu0 %v38_v0  ;;  %856 = vmatprep.subr.bf16.mxu1 %v962_v3  ;;  %v1010_v6 = vshrl.u32 %v126_v5, 7  ;;  %vm858_vm3 = vmpackc.low %vm132_vm2, %vm132_vm2  ;;  %v1032_v21 = vld [vmem:[%s1102_s1 + $0x8] sm:$0xff]  ;;  %v763_v24 = vadd.f32 -1.0, %v1027_v19  ;;  %vm230_vm4 = vcmask 130048   ;;  %v39_v51 = vld [vmem:[#allocation2 + $0x10] sm:$0xff]  ;;  %s965_s1 = smov [#allocation5]  }
  0x16   :  { %810 = vmatmul.mubr.msk.f32.vlgmr.msra.gmra.mrb[0].mxu0 %vm44_vm0, %v30_v2  ;;  %816 = vmatprep.mubr.msk.f32.mxu1 %vm963_vm1, %v964_v4  ;;  %v764_v28 = vadd.f32 -1.0, %v1032_v21  ;;  %v40_v52 = vld [vmem:[#allocation2 + $0x18] sm:$0xff]  ;;  %v41_v60 = vld [vmem:[#allocation2 + $0x20] sm:$0xff]  ;;  %v42_v61 = vld [vmem:[#allocation2 + $0x28] sm:$0xff]  ;;  %s751_s5 = sshll.u32 %s965_s1, 4  ;;  %s752_s5 = int_to_ptr.vmem [resolvable:$true] %s751_s5 }
  0x17   :  { %v128_v7 = vsub.s32 1, %v1010_v6  ;;  %v220_v18 = vsub.s32 0, %v1010_v6  ;;  %v1038_v31 = vmul.f32 1e+30, %v763_v24  ;;  %v864_v53 = vpack.c.bf16 %v40_v52, %v39_v51  ;;  %vm874_vm5 = vmpackc.low %vm44_vm0, %vm44_vm0  ;;  %s933_s6 = scalar_lea.vmem %s752_s5, 256  ;;  %p938_p9 = scmp.lt.s32.totalorder %s752_s5, %s752_s5 }
  0x18   :  { %v1040_v33 = vmul.f32 1e+30, %v764_v28  ;;  %v868_v62 = vpack.c.bf16 %v42_v61, %v41_v60  ;;  %v257_v63 = vsub.s32 2, %v1010_v6  ;;  %p934_p8 = scmp.ne.s32.totalorder %s752_s5, %s933_s6  ;;  %p939_p10 = scmp.lt.s32.totalorder %s933_s6, %s933_s6 }
  0x19   :  { %v129_v9 = vrot.slane %v1013_v8, %v128_v7 }
  0x1a   :  { %v258_v0 = vrot.slane %v1013_v8, %v257_v63  ;;  %p940_p11 = por %p939_p10, %p938_p9 }
  0x1c   :  { %p941_p12 = pnand %p940_p11, %p934_p8 }
  0xe9   :  { %v811_v10 = vpop.f32.mrb[0].mxu0 }
  0xea   :  { %v117_v11 = vpop.f32.mrb[1].mxu0  ;;  %v131_v14 = vmul.f32 %v811_v10, %v129_v9 }
  0xeb   :  { %v857_v12 = vpack.c.bf16 %v811_v10, %v117_v11  ;;  %v130_v13 = vmul.f32 %v129_v9, %v117_v11  ;;  %v425_v9 = vsub.s32 4, %v1010_v6 }
  0xec   :  { %v136_v16 = vsel %vm132_vm2, %v131_v14, 0.0 }
  0xed   :  { %859 = vmatpush3.bf16.xpose.msk.msra.mxu1 %vm858_vm3, %v857_v12  ;;  %861 = vmatprep.subr.bf16.mxu0 %v857_v12  ;;  %v133_v15 = vsel %vm132_vm2, %v130_v13, 0.0  ;;  %v426_v10 = vrot.slane %v1013_v8, %v425_v9 }
  0xee   :  { %863 = vmatpush3.bf16.msra.mxu0 %v857_v12  ;;  %134 = vadd.xlane.f32.xlu0 %v133_v15 }
  0xef   :  { %872 = vmatprep.subr.bf16.mxu1 %v962_v3  ;;  %865 = vmatprep.subr.bf16.mxu0 %v864_v53 }
  0xf2   :  { %137 = vadd.xlane.f32.xlu0 %v136_v16 }
  0xf4   :  { %817 = vmatmul.mubr.msk.f32.vlgmr.msra.gmra.mrb[0].mxu1 %vm132_vm2, %v1013_v8 }
  0xf5   :  { %841 = vmatprep.mubr.msk.f32.mxu1 %vm963_vm1, %v964_v4 }
 0x17b   :  { %v135_v17 = vpop.xlane.xlu0 %134 }
 0x17f   :  { %v138_v25 = vpop.xlane.xlu0 %137 }
 0x1c7   :  { %v214_v20 = vpop.f32.mrb[0].mxu1 }
 0x1c8   :  { %v221_v22 = vrot.slane %v214_v20, %v220_v18  ;;  %v818_v23 = vpop.f32.mrb[1].mxu1  ;;  %v435_v20 = vrot.slane %v1013_v8, 3 }
 0x1ca   :  { %v222_v26 = vadd.f32 %v221_v22, %v135_v17  ;;  %v223_v27 = vadd.f32 %v221_v22, %v138_v25 }
 0x1cc   :  { %v224_v29 = vmul.f32 0.2, %v222_v26  ;;  %v225_v30 = vmul.f32 0.2, %v223_v27 }
 0x1ce   :  { %v226_v32 = vmax.f32 %v222_v26, %v224_v29  ;;  %v227_v34 = vmax.f32 %v223_v27, %v225_v30 }
 0x1d0   :  { %v228_v35 = vadd.f32 %v226_v32, %v1038_v31  ;;  %v229_v37 = vadd.f32 %v227_v34, %v1040_v33 }
 0x1d2   :  { %v231_v36 = vsel %vm230_vm4, %v228_v35, -inf  ;;  %v234_v38 = vsel %vm230_vm4, %v229_v37, -inf }
 0x1d3   :  { %232 = vmax.xlane.f32.xlu1 %v231_v36 }
 0x1d7   :  { %235 = vmax.xlane.f32.xlu1 %v234_v38 }
 0x260   :  { %v233_v39 = vpop.xlane.xlu1 %232 }
 0x261   :  { %v237_v40 = vsub.f32 %v228_v35, %v233_v39 }
 0x263   :  { %v239_v41 = vmul.f32 1.442695, %v237_v40 }
 0x264   :  { %v236_v42 = vpop.xlane.xlu1 %235 }
 0x265   :  { %887 = vpow2.f32 %v239_v41  ;;  %v238_v43 = vsub.f32 %v229_v37, %v236_v42 }
 0x267   :  { %v241_v44 = vmul.f32 1.442695, %v238_v43 }
 0x269   :  { %889 = vpow2.f32 %v241_v44 }
 0x26f   :  { %v888_v45 = vpop.eup %887 }
 0x270   :  { %v243_v46 = vmul.f32 %v888_v45, %v1027_v19 }
 0x272   :  { %v245_v47 = vsel %vm230_vm4, %v243_v46, 0.0 }
 0x273   :  { %v890_v48 = vpop.eup %889  ;;  %246 = vadd.xlane.f32.xlu0 %v245_v47 }
 0x274   :  { %v244_v49 = vmul.f32 %v890_v48, %v1032_v21 }
 0x276   :  { %v248_v50 = vsel %vm230_vm4, %v244_v49, 0.0 }
 0x277   :  { %249 = vadd.xlane.f32.xlu1 %v248_v50 }
 0x300   :  { %v247_v54 = vpop.xlane.xlu0 %246 }
 0x301   :  { %891 = vrcp.f32 %v247_v54 }
 0x304   :  { %v250_v55 = vpop.xlane.xlu1 %249 }
 0x305   :  { %893 = vrcp.f32 %v250_v55 }
 0x30b   :  { %v892_v56 = vpop.eup %891 }
 0x30c   :  { %v253_v57 = vmul.f32 %v892_v56, %v243_v46 }
 0x30e   :  { %823 = vmatprep.mubr.msk.f32.mxu0 %vm230_vm4, %v253_v57 }
 0x30f   :  { %v894_v58 = vpop.eup %893 }
 0x310   :  { %v254_v59 = vmul.f32 %v894_v58, %v244_v49 }
 0x312   :  { %824 = vmatmul.mubr.msk.f32.vlgmr.msra.gmra.mrb[2].mxu0 %vm230_vm4, %v254_v59 }
 0x313   :  { %867 = vmatpush3.bf16.msra.mxu0 %v864_v53 }
 0x314   :  { %869 = vmatprep.subr.bf16.mxu0 %v868_v62 }
 0x317   :  { %871 = vmatpush3.bf16.msra.mxu0 %v868_v62 }
 0x3e5   :  { %v825_v1 = vpop.f32.mrb[2].mxu0 }
 0x3e6   :  { %v337_v2 = vadd.f32 %v825_v1, %v258_v0  ;;  %v331_v3 = vpop.f32.mrb[3].mxu0 }
 0x3e7   :  { %v332_v4 = vadd.f32 %v331_v3, %v258_v0 }
 0x3e8   :  { %v341_v7 = vmax.f32 %v337_v2, 0.0 }
 0x3e9   :  { %v340_v5 = vmax.f32 %v332_v4, 0.0 }
 0x3eb   :  { %834 = vmatprep.mubr.msk.f32.mxu0 %vm132_vm2, %v340_v5 }
 0x3ec   :  { %835 = vmatmul.mubr.msk.f32.vlgmr.msra.gmra.mrb[4].mxu0 %vm132_vm2, %v341_v7  ;;  %v37_v7 = vld [vmem:[#allocation2] sm:$0xff] }
 0x4bf   :  { %v836_v11 = vpop.f32.mrb[4].mxu0 }
 0x4c0   :  { %v428_v12 = vmul.f32 %v836_v11, %v426_v10  ;;  %v414_v13 = vpop.f32.mrb[5].mxu0 }
 0x4c1   :  { %v427_v14 = vmul.f32 %v426_v10, %v414_v13  ;;  %v873_v15 = vpack.c.bf16 %v836_v11, %v414_v13 }
 0x4c2   :  { %v432_v16 = vsel %vm44_vm0, %v428_v12, 0.0 }
 0x4c3   :  { %433 = vadd.xlane.f32.xlu1 %v432_v16  ;;  %875 = vmatpush3.bf16.xpose.msk.msra.mxu1 %vm874_vm5, %v873_v15  ;;  %v429_v17 = vsel %vm44_vm0, %v427_v14, 0.0 }
 0x4c4   :  { %877 = vmatprep.subr.bf16.mxu0 %v873_v15  ;;  %430 = vadd.xlane.f32.xlu0 %v429_v17  ;;  %v661_v17 = vsub.s32 6, %v1010_v6 }
 0x4c5   :  { %879 = vmatpush3.bf16.msra.mxu0 %v873_v15  ;;  %851 = vmatprep.subr.mxu1 %v37_v7 }
 0x4ca   :  { %842 = vmatmul.mubr.msk.f32.vlgmr.msra.gmra.mrb[2].mxu1 %vm44_vm0, %v435_v20  ;;  %v662_v20 = vrot.slane %v1013_v8, %v661_v17 }
 0x4cb   :  { %852 = vmatpush3.msra.mxu1 %v37_v7 }
 0x550   :  { %v434_v25 = vpop.xlane.xlu1 %433 }
 0x551   :  { %v431_v26 = vpop.xlane.xlu0 %430 }
 0x59d   :  { %v510_v22 = vpop.f32.mrb[2].mxu1 }
 0x59e   :  { %v517_v23 = vrot.slane %v510_v22, %v220_v18  ;;  %v843_v24 = vpop.f32.mrb[3].mxu1 }
 0x5a0   :  { %v518_v27 = vadd.f32 %v517_v23, %v431_v26  ;;  %v519_v28 = vadd.f32 %v517_v23, %v434_v25 }
 0x5a2   :  { %v520_v29 = vmul.f32 0.2, %v518_v27  ;;  %v521_v30 = vmul.f32 0.2, %v519_v28 }
 0x5a4   :  { %v523_v32 = vmax.f32 %v519_v28, %v521_v30  ;;  %v522_v34 = vmax.f32 %v518_v27, %v520_v29 }
 0x5a6   :  { %v525_v35 = vadd.f32 %v523_v32, %v1040_v33  ;;  %v524_v36 = vadd.f32 %v522_v34, %v1038_v31 }
 0x5a8   :  { %v529_v37 = vsel %vm230_vm4, %v525_v35, -inf  ;;  %v526_v38 = vsel %vm230_vm4, %v524_v36, -inf }
 0x5a9   :  { %530 = vmax.xlane.f32.xlu1 %v529_v37  ;;  %527 = vmax.xlane.f32.xlu0 %v526_v38 }
 0x636   :  { %v531_v18 = vpop.xlane.xlu1 %530  ;;  %v528_v39 = vpop.xlane.xlu0 %527 }
 0x637   :  { %v533_v40 = vsub.f32 %v525_v35, %v531_v18  ;;  %v532_v41 = vsub.f32 %v524_v36, %v528_v39 }
 0x639   :  { %v536_v42 = vmul.f32 1.442695, %v533_v40  ;;  %v534_v43 = vmul.f32 1.442695, %v532_v41 }
 0x63b   :  { %895 = vpow2.f32 %v536_v42 }
 0x63c   :  { %897 = vpow2.f32 %v534_v43 }
 0x645   :  { %v896_v44 = vpop.eup %895 }
 0x646   :  { %v898_v45 = vpop.eup %897  ;;  %v539_v33 = vmul.f32 %v896_v44, %v1032_v21 }
 0x647   :  { %v538_v31 = vmul.f32 %v898_v45, %v1027_v19  ;;  %v552_v19 = vsub.s32 5, %v1010_v6 }
 0x648   :  { %v543_v46 = vsel %vm230_vm4, %v539_v33, 0.0 }
 0x649   :  { %544 = vadd.xlane.f32.xlu1 %v543_v46  ;;  %v540_v47 = vsel %vm230_vm4, %v538_v31, 0.0  ;;  %v553_v21 = vrot.slane %v1013_v8, %v552_v19 }
 0x64a   :  { %541 = vadd.xlane.f32.xlu0 %v540_v47 }
 0x6d6   :  { %v545_v48 = vpop.xlane.xlu1 %544 }
 0x6d7   :  { %899 = vrcp.f32 %v545_v48  ;;  %v542_v49 = vpop.xlane.xlu0 %541 }
 0x6d8   :  { %901 = vrcp.f32 %v542_v49 }
 0x6e1   :  { %v900_v50 = vpop.eup %899 }
 0x6e2   :  { %v902_v51 = vpop.eup %901  ;;  %v549_v52 = vmul.f32 %v900_v50, %v539_v33 }
 0x6e3   :  { %v548_v53 = vmul.f32 %v902_v51, %v538_v31 }
 0x6e5   :  { %848 = vmatprep.mubr.msk.f32.mxu0 %vm230_vm4, %v548_v53 }
 0x6e6   :  { %849 = vmatmul.mubr.msk.f32.vlgmr.msra.gmra.mrb[6].mxu0 %vm230_vm4, %v549_v52 }
 0x7b9   :  { %v850_v54 = vpop.f32.mrb[6].mxu0 }
 0x7ba   :  { %v632_v55 = vadd.f32 %v850_v54, %v553_v21  ;;  %v626_v56 = vpop.f32.mrb[7].mxu0 }
 0x7bb   :  { %v627_v57 = vadd.f32 %v626_v56, %v553_v21 }
 0x7bc   :  { %v638_v58 = vsel %vm44_vm0, %v632_v55, -inf }
 0x7bd   :  { %639 = vmax.xlane.f32.xlu1 %v638_v58  ;;  %v635_v59 = vsel %vm44_vm0, %v627_v57, -inf }
 0x7be   :  { %636 = vmax.xlane.f32.xlu0 %v635_v59 }
 0x84a   :  { %v640_v60 = vpop.xlane.xlu1 %639 }
 0x84b   :  { %v642_v61 = vsub.f32 %v632_v55, %v640_v60  ;;  %v637_v62 = vpop.xlane.xlu0 %636 }
 0x84c   :  { %v641_v63 = vsub.f32 %v627_v57, %v637_v62 }
 0x84d   :  { %v645_v0 = vmul.f32 1.442695, %v642_v61 }
 0x84e   :  { %v643_v1 = vmul.f32 1.442695, %v641_v63 }
 0x84f   :  { %903 = vpow2.f32 %v645_v0 }
 0x850   :  { %905 = vpow2.f32 %v643_v1 }
 0x859   :  { %v904_v2 = vpop.eup %903 }
 0x85a   :  { %v906_v3 = vpop.eup %905  ;;  %v650_v4 = vsel %vm44_vm0, %v904_v2, 0.0 }
 0x85b   :  { %651 = vadd.xlane.f32.xlu1 %v650_v4  ;;  %v647_v5 = vsel %vm44_vm0, %v906_v3, 0.0 }
 0x85c   :  { %648 = vadd.xlane.f32.xlu0 %v647_v5 }
 0x8e8   :  { %v652_v9 = vpop.xlane.xlu1 %651 }
 0x8e9   :  { %907 = vlog2.f32 %v652_v9  ;;  %v649_v10 = vpop.xlane.xlu0 %648 }
 0x8ea   :  { %909 = vlog2.f32 %v649_v10 }
 0x8f3   :  { %v908_v11 = vpop.eup %907 }
 0x8f4   :  { %v910_v12 = vpop.eup %909  ;;  %v656_v13 = vmul.f32 0.6931472, %v908_v11 }
 0x8f5   :  { %v654_v14 = vmul.f32 0.6931472, %v910_v12 }
 0x8f6   :  { %v658_v16 = vsub.f32 %v642_v61, %v656_v13 }
 0x8f7   :  { %v657_v15 = vsub.f32 %v641_v63, %v654_v14 }
 0x8f9   :  { %853 = vmatprep.mubr.msk.f32.mxu1 %vm44_vm0, %v657_v15 }
 0x8fa   :  { %854 = vmatmul.mubr.msk.f32.vlgmr.msra.gmra.mrb[4].mxu1 %vm44_vm0, %v658_v16 }
 0x9cd   :  { %v855_v22 = vpop.f32.mrb[4].mxu1 }
 0x9ce   :  { %v741_v23 = vadd.f32 %v855_v22, %v662_v20  ;;  %v735_v24 = vpop.f32.mrb[5].mxu1 }
 0x9cf   :  { %v736_v25 = vadd.f32 %v735_v24, %v662_v20 }
 0x9d0   :  { %745 = vst [vmem:[#allocation5 + $0x8] sm:$0xff] %v741_v23 }
 0x9d1   :  { %744 = vst [vmem:[#allocation5] sm:$0xff] %v736_v25 }
 0x9d2   :  { %944 = shalt.err (!%p941_p12)
}
 0x9d3   :  { %s945_s9 = scalar_lea.hbm %s1104_s3, 256 }
 0x9d4   :  { %p946_p13 = scmp.ne.s32.totalorder %s1104_s3, %s945_s9  ;;  %p949_p0 = scmp.lt.u32.totalorder %s945_s9, %s1104_s3 }
 0x9d6   :  { %p951_p1 = pnand %p949_p0, %p946_p13 }
 0x9d8   :  { %954 = shalt.err (!%p951_p1)
}
 0x9d9   :  { %757 = dma.vmem_to_hbm [thread:$0]  %s752_s5, 256, %s1104_s3, [#allocation4], %s960_s22, %s960_s22, %s961_s23  }
 0x9da   :  { %957 = dma.done.wait [#allocation4], 256  }
 0x9db   :  { %958 = vsyncadd [#allocation4], 4294967040 }
 0x9dc   :  { %761 = vsyncpa [#allocation3], 1 }
 0x9dd   :  { %762 = vsyncpa [#allocation4], 1 }

</bundles_post_ra>
